<compile_context>
chip_gen: v5e
topology: v5e:2x2
jax: 0.10.0
libtpu: 0.0.40
codegen_flags: <defaults>
</compile_context>

<pallas_src>
import math
import jax
import jax.numpy as jnp
from jax.experimental import pallas as pl
from jax.experimental.pallas import tpu as pltpu


def _make_kernel(nk, tk, k_rem, has_bias):
    """Build a matmul(+bias) kernel specialized at trace time."""

    def load_x(x_ref, k):
        x = x_ref[...]
        if k_rem:
            # Last K tile is partial: zero the out-of-range columns so the
            # unspecified padding never reaches the accumulator.
            limit = jnp.where(k == nk - 1, k_rem, tk)
            kk = jax.lax.broadcasted_iota(jnp.int32, x.shape, 1)
            x = jnp.where(kk < limit, x, jnp.zeros_like(x))
        return x

    if nk == 1:
        # Single K step: write the result directly, no accumulator scratch.
        if has_bias:
            def kernel(x_ref, w_ref, b_ref, o_ref):
                out = jnp.dot(load_x(x_ref, 0), w_ref[...],
                              preferred_element_type=jnp.float32)
                o_ref[...] = (out + b_ref[...]).astype(o_ref.dtype)
        else:
            def kernel(x_ref, w_ref, o_ref):
                out = jnp.dot(load_x(x_ref, 0), w_ref[...],
                              preferred_element_type=jnp.float32)
                o_ref[...] = out.astype(o_ref.dtype)
    else:
        if has_bias:
            def kernel(x_ref, w_ref, b_ref, o_ref, acc_ref):
                k = pl.program_id(2)

                @pl.when(k == 0)
                def _():
                    acc_ref[...] = jnp.zeros_like(acc_ref)

                acc_ref[...] += jnp.dot(load_x(x_ref, k), w_ref[...],
                                        preferred_element_type=jnp.float32)

                @pl.when(k == nk - 1)
                def _():
                    # Bias add is cheap VPU filler hidden under MXU slack.
                    o_ref[...] = (acc_ref[...] + b_ref[...]).astype(o_ref.dtype)
        else:
            def kernel(x_ref, w_ref, o_ref, acc_ref):
                k = pl.program_id(2)

                @pl.when(k == 0)
                def _():
                    acc_ref[...] = jnp.zeros_like(acc_ref)

                acc_ref[...] += jnp.dot(load_x(x_ref, k), w_ref[...],
                                        preferred_element_type=jnp.float32)

                @pl.when(k == nk - 1)
                def _():
                    o_ref[...] = acc_ref[...].astype(o_ref.dtype)

    return kernel


def matmul_pallas(x, matrix, bias=None, *, tm=256, tn=512, tk=512):
    """x: (B, S, K); matrix: (K, N); bias: (1, 1, N) or None. Returns (B, S, N)."""
    B, S, K = x.shape
    Kw, N = matrix.shape
    assert K == Kw
    M = B * S
    x2 = x.reshape(M, K)              # metadata-only; no extra HBM pass

    # Tile selection: preferred sizes (multiples of (8,128)) for large dims,
    # full-extent blocks for small dims -> always legal, never needs padding.
    tm_eff = tm if M >= tm else M
    tn_eff = tn if N >= tn else N
    tk_eff = tk if K >= tk else K

    nk = pl.cdiv(K, tk_eff)
    k_rem = K % tk_eff                # handled by in-kernel masking on last K tile
    grid = (pl.cdiv(M, tm_eff), pl.cdiv(N, tn_eff), nk)

    has_bias = bias is not None
    kernel = _make_kernel(nk, tk_eff, k_rem, has_bias)

    in_specs = [
        pl.BlockSpec((tm_eff, tk_eff), lambda i, j, k: (i, k)),
        pl.BlockSpec((tk_eff, tn_eff), lambda i, j, k: (k, j)),
    ]
    args = [x2, matrix]
    if has_bias:
        in_specs.append(pl.BlockSpec((1, tn_eff), lambda i, j, k: (0, j)))
        args.append(bias.reshape(1, N))

    scratch_shapes = []
    if nk > 1:
        scratch_shapes.append(pltpu.VMEM((tm_eff, tn_eff), jnp.float32))

    # Explicit VMEM budget from the chosen tiles (double-buffered blocks + f32
    # accumulator), with headroom; stays under v7x's 64 MiB physical VMEM.
    elt = jnp.dtype(x.dtype).itemsize
    vmem_est = (2 * tm_eff * tk_eff * elt                     # x blocks
                + 2 * tk_eff * tn_eff * elt                   # weight blocks
                + 2 * tm_eff * tn_eff * elt                   # output blocks
                + (tm_eff * tn_eff * 4 if nk > 1 else 0)      # f32 accumulator
                + (2 * tn_eff * elt if has_bias else 0))      # bias blocks
    vmem_limit = int(min(56 << 20, max(2 * vmem_est, 32 << 20)))

    cost = pl.CostEstimate(
        flops=2 * M * N * K,
        transcendentals=0,
        bytes_accessed=(M * K + K * N + M * N + (N if has_bias else 0)) * elt,
    )

    out = pl.pallas_call(
        kernel,
        out_shape=jax.ShapeDtypeStruct((M, N), x.dtype),
        grid_spec=pltpu.PrefetchScalarGridSpec(
            num_scalar_prefetch=0,
            grid=grid,
            in_specs=in_specs,
            out_specs=pl.BlockSpec((tm_eff, tn_eff), lambda i, j, k: (i, j)),
            scratch_shapes=scratch_shapes,
        ),
        compiler_params=pltpu.CompilerParams(
            dimension_semantics=("parallel", "parallel", "arbitrary"),
            vmem_limit_bytes=vmem_limit,
        ),
        cost_estimate=cost,
    )(*args)

    return out.reshape(B, S, N)


def init_matmul_params(key, in_channels, out_channels, use_bias=True):
    """Deterministic Xavier-normal init, matching torch.nn.init.xavier_normal_."""
    std = math.sqrt(2.0 / (in_channels + out_channels))
    matrix = std * jax.random.normal(key, (in_channels, out_channels),
                                     dtype=jnp.float32)
    bias = jnp.zeros((1, 1, out_channels), dtype=jnp.float32) if use_bias else None
    return matrix, bias


if __name__ == "__main__":
    key = jax.random.PRNGKey(0)
    k_x, k_w = jax.random.split(key)

    batch, seq, in_ch, out_ch = 2, 8, 32, 32
    x = jax.random.normal(k_x, (batch, seq, in_ch), dtype=jnp.float32)
    matrix, bias = init_matmul_params(k_w, in_ch, out_ch, use_bias=True)

    y = matmul_pallas(x, matrix, bias)
    jax.block_until_ready(y)

    # sanity check vs plain JAX reference
    y_ref = jnp.matmul(x, matrix, precision=jax.lax.Precision.HIGHEST) + bias
    assert y.shape == (batch, seq, out_ch)
    assert jnp.allclose(y, y_ref, atol=1e-5, rtol=1e-5)

    # no-bias path uses the bias-free kernel specialization
    y_nb = matmul_pallas(x, matrix, None)
    jax.block_until_ready(y_nb)
    assert jnp.allclose(y_nb, jnp.matmul(x, matrix,
                                         precision=jax.lax.Precision.HIGHEST),
                        atol=1e-5, rtol=1e-5)

    print("KERNEL_OK")
</pallas_src>

<mosaic_0001>
module attributes {stable_mosaic.version = 11 : i64} {
  func.func @kernel(%arg0: i32, %arg1: i32, %arg2: i32, %arg3: memref<16x32xf32, #tpu.memory_space<vmem>>, %arg4: memref<32x32xf32, #tpu.memory_space<vmem>>, %arg5: memref<1x32xf32, #tpu.memory_space<vmem>>, %arg6: memref<16x32xf32, #tpu.memory_space<vmem>>) attributes {dimension_semantics = [#tpu.dimension_semantics<parallel>, #tpu.dimension_semantics<parallel>, #tpu.dimension_semantics<arbitrary>], iteration_bounds = array<i64: 1, 1, 1>, scalar_prefetch = 0 : i64, scratch_operands = 0 : i64, tpu.core_type = #tpu.core_type<tc>, window_params = [{transform_indices = @transform_0, window_bounds = array<i64: 16, 32>}, {transform_indices = @transform_1, window_bounds = array<i64: 32, 32>}, {transform_indices = @transform_2, window_bounds = array<i64: 1, 32>}, {transform_indices = @transform_3, window_bounds = array<i64: 16, 32>}]} {
    %c0 = arith.constant 0 : index
    %c0_0 = arith.constant 0 : index
    %0 = vector.load %arg3[%c0, %c0_0] : memref<16x32xf32, #tpu.memory_space<vmem>>, vector<16x32xf32>
    %c0_1 = arith.constant 0 : index
    %c0_2 = arith.constant 0 : index
    %1 = vector.load %arg4[%c0_1, %c0_2] : memref<32x32xf32, #tpu.memory_space<vmem>>, vector<32x32xf32>
    %cst = arith.constant dense<0.000000e+00> : vector<16x32xf32>
    %2 = tpu.matmul %0, %1, %cst {dimension_numbers = #tpu.dot_dimension_numbers<[1], [0], [0], [1], [0, 0, 1, 1], [], []>} : vector<16x32xf32>, vector<32x32xf32>, vector<16x32xf32> -> vector<16x32xf32>
    %c0_3 = arith.constant 0 : index
    %c0_4 = arith.constant 0 : index
    %3 = vector.load %arg5[%c0_3, %c0_4] : memref<1x32xf32, #tpu.memory_space<vmem>>, vector<1x32xf32>
    %4 = vector.broadcast %3 : vector<1x32xf32> to vector<16x32xf32>
    %5 = arith.addf %2, %4 : vector<16x32xf32>
    %c0_5 = arith.constant 0 : index
    %c0_6 = arith.constant 0 : index
    %6 = vector.load %arg6[%c0_5, %c0_6] : memref<16x32xf32, #tpu.memory_space<vmem>>, vector<16x32xf32>
    tpu.vector_store %arg6[%c0_5, %c0_6], %5 {strides = array<i32>} : memref<16x32xf32, #tpu.memory_space<vmem>>, vector<16x32xf32>,
    return
  }
  func.func @transform_0(%arg0: i32, %arg1: i32, %arg2: i32) -> (i32, i32) {
    %c0_i32 = arith.constant 0 : i32
    return %arg0, %arg2 : i32, i32
  }
  func.func @transform_1(%arg0: i32, %arg1: i32, %arg2: i32) -> (i32, i32) {
    %c0_i32 = arith.constant 0 : i32
    return %arg2, %arg1 : i32, i32
  }
  func.func @transform_2(%arg0: i32, %arg1: i32, %arg2: i32) -> (i32, i32) {
    %c0_i32 = arith.constant 0 : i32
    %c0_i32_0 = arith.constant 0 : i32
    return %c0_i32, %arg1 : i32, i32
  }
  func.func @transform_3(%arg0: i32, %arg1: i32, %arg2: i32) -> (i32, i32) {
    %c0_i32 = arith.constant 0 : i32
    return %arg0, %arg1 : i32, i32
  }
}

</mosaic_0001>

<bundles_post_ra>
// kernel: tpu_custom_call.1
= control target key start
LH: loop header
LB: loop body
LE: loop exit
PB: predicated region body
PF: predicated region fallthrough
CT: control target
= control target key end

     0   :  { %8 = vsyncpa [#allocation3], 0  ;;  %s249_s0 = inlined_call_operand.hbm [shape: f32[16,32], index: 0, kind: input, shape index: {}]   ;;  %s250_s1 = inlined_call_operand.hbm [shape: f32[32,32], index: 1, kind: input, shape index: {}]   ;;  %s251_s2 = inlined_call_operand.vmem [shape: f32[1,32], index: 2, kind: input, shape index: {}]   ;;  %s252_s3 = inlined_call_operand.hbm [shape: f32[16,32], index: 3, kind: output, shape index: {}]  }
   0x1   :  { %9 = vsyncpa [#allocation6], 0 }
   0x2   :  { %10 = vsyncpa [#allocation4], 0  ;;  %s15_s14 = sshll.u32 %s249_s0, 4  ;;  %s199_s15 = smov [#allocation2]   ;;  %s16_s14 = int_to_ptr.hbm [resolvable:$true] %s15_s14 }
   0x3   :  { %s17_s16 = sshll.u32 %s199_s15, 4  ;;  %s28_s19 = sshll.u32 %s250_s1, 4  ;;  %s18_s16 = int_to_ptr.vmem [resolvable:$true] %s17_s16  ;;  %s29_s19 = int_to_ptr.hbm [resolvable:$true] %s28_s19 }
   0x4   :  { %s200_s20 = smov 128   ;;  %s201_s21 = smov 8  }
   0x5   :  { %23 = dma.hbm_to_vmem [thread:$0]  %s16_s14, 256, %s18_s16, [#allocation3], %s200_s20, %s200_s20, %s201_s21  }
   0x6   :  { %s202_s22 = smov [#allocation5]  }
   0x7   :  { %s30_s23 = sshll.u32 %s202_s22, 4  ;;  %s31_s23 = int_to_ptr.vmem [resolvable:$true] %s30_s23 }
   0x8   :  { %36 = dma.hbm_to_vmem [thread:$0]  %s29_s19, 512, %s31_s23, [#allocation6], %s200_s20, %s200_s20, %s201_s21  }
   0x9   :  { %193 = dma.done.wait [#allocation3], 256  }
   0xa   :  { %194 = vsyncadd [#allocation3], 4294967040 }
   0xb   :  { %195 = dma.done.wait [#allocation6], 512  }
   0xc   :  { %196 = vsyncadd [#allocation6], 4294966784  ;;  %v52_v0 = vld [vmem:[#allocation5 + $0x18] sm:$0xff]  ;;  %v51_v1 = vld [vmem:[#allocation5 + $0x10] sm:$0xff]  ;;  %vm57_vm0 = vcmask 261120   ;;  %s203_s24 = smov [#allocation7]  }
   0xd   :  { %76 = vmatpush.msra.mxu0 %v52_v0  ;;  %111 = vmatpush.msra.mxu1 %v52_v0  ;;  %v50_v2 = vld [vmem:[#allocation5 + $0x8] sm:$0xff]  ;;  %v49_v3 = vld [vmem:[#allocation5] sm:$0xff]  ;;  %v47_v4 = vld [vmem:[#allocation2] sm:$0xff]  ;;  %s93_s25 = sshll.u32 %s203_s24, 4  ;;  %s95_s28 = sshll.u32 %s252_s3, 4  ;;  %s94_s25 = int_to_ptr.vmem [resolvable:$true] %s93_s25  ;;  %s96_s28 = int_to_ptr.hbm [resolvable:$true] %s95_s28 }
   0xe   :  { %v48_v5 = vld [vmem:[#allocation2 + $0x8] sm:$0xff]  ;;  %v120_v6 = vld [vmem:[%s251_s2] ss:$0 sm:$0xff] }
   0xf   :  { %77 = vmatpush.msra.mxu0 %v51_v1  ;;  %112 = vmatpush.msra.mxu1 %v51_v1 }
  0x11   :  { %78 = vmatpush.msra.mxu0 %v50_v2  ;;  %113 = vmatpush.msra.mxu1 %v50_v2 }
  0x13   :  { %79 = vmatpush.msra.mxu0 %v49_v3  ;;  %114 = vmatpush.msra.mxu1 %v49_v3 }
  0x14   :  { %109 = vmatmul.msk.f32.vlgmr.msra.gmra.mxu0 %vm57_vm0, %v47_v4  ;;  %110 = vmatmul.msk.f32.vlgmr.msra.gmra.mxu1 %vm57_vm0, %v48_v5 }
  0x91   :  { %v81_v7 = vpop.f32.mrf.mxu0  ;;  %v84_v8 = vpop.f32.mrf.mxu1 }
  0x92   :  { %v82_v9 = vadd.f32 %v120_v6, %v81_v7  ;;  %v85_v10 = vadd.f32 %v120_v6, %v84_v8 }
  0x94   :  { %87 = vst.msk [vmem:[#allocation7] sm:$0xff] %vm57_vm0, %v82_v9 }
  0x95   :  { %88 = vst.msk [vmem:[#allocation7 + $0x8] sm:$0xff] %vm57_vm0, %v85_v10 }
  0x96   :  { %101 = dma.vmem_to_hbm [thread:$0]  %s94_s25, 256, %s96_s28, [#allocation4], %s200_s20, %s200_s20, %s201_s21  }
  0x97   :  { %197 = dma.done.wait [#allocation4], 256  }
  0x98   :  { %198 = vsyncadd [#allocation4], 4294967040 }
  0x99   :  { %106 = vsyncpa [#allocation3], 1 }
  0x9a   :  { %107 = vsyncpa [#allocation6], 1 }
  0x9b   :  { %108 = vsyncpa [#allocation4], 1 }

</bundles_post_ra>
